<compile_context>
chip_gen: v6e
topology: v6e:2x2x1
jax: 0.10.0
libtpu: 0.0.40
codegen_flags: <defaults>
</compile_context>

<pallas_src>
import functools

import jax
import jax.numpy as jnp
from jax.experimental import pallas as pl
from jax.experimental.pallas import tpu as pltpu

EPS = 1e-5
_LANE = 128


# ---------------------------------------------------------------------------
# VMEM budgets / tile planning (generation aware, native-dtype accounting).
# ---------------------------------------------------------------------------
def _vmem_capacity_bytes():
    try:
        return int(pltpu.get_tpu_info().vmem_capacity_bytes)
    except Exception:  # conservative fallback, safe on every generation
        return 64 << 20


def _pick_hw_tile(HW, row_bytes, target_bytes):
    """Largest 128-multiple lane tile whose block stays under target_bytes."""
    if HW <= _LANE or row_bytes * HW <= target_bytes:
        return HW
    lanes = (target_bytes // max(row_bytes, 1)) // _LANE * _LANE
    return min(HW, max(_LANE, lanes))


def _resident_plan(N, C, HW, itemsize, cap, vmem_limit, target_block):
    hw_tile = _pick_hw_tile(HW, N * C * itemsize, target_block)
    num_hw = -(-HW // hw_tile)
    block_bytes = N * C * hw_tile * itemsize
    slab_bytes = N * C * num_hw * hw_tile * itemsize
    fits = (slab_bytes <= min(cap // 3, 36 << 20)
            and slab_bytes + 4 * block_bytes + (4 << 20) <= vmem_limit)
    return fits, hw_tile, num_hw


def _two_pass_plan(N, C, HW, itemsize, target_bytes):
    sample_bytes = C * HW * itemsize
    if sample_bytes <= target_bytes:
        nb = max(1, min(N, target_bytes // max(sample_bytes, 1)))
        while N % nb:  # keep whole N-blocks (no partial leading blocks)
            nb -= 1
        hw_tile = HW
    else:
        nb = 1
        hw_tile = _pick_hw_tile(HW, C * itemsize, target_bytes)
    num_nb = N // nb
    num_hw = -(-HW // hw_tile)
    # Prefer an even HW-tile count when only the HW axis can feed both
    # TensorCores (v7x megacore) -- avoids a wasted duplicate fetch.
    if num_nb == 1 and hw_tile < HW and num_hw % 2 == 1:
        for cand in (hw_tile - _LANE, hw_tile + _LANE, hw_tile - 2 * _LANE):
            if cand >= _LANE and (-(-HW // cand)) % 2 == 0:
                hw_tile = cand
                num_hw = -(-HW // cand)
                break
    split = 2 if (num_nb == 1 and num_hw >= 2 and num_hw % 2 == 0) else 1
    return nb, num_nb, hw_tile, num_hw, split


def _act(y, act):
    if act == "relu":
        return jnp.maximum(y, 0.0)
    return y * jax.nn.sigmoid(y)  # SiLU / swish


# ---------------------------------------------------------------------------
# VMEM-resident single-HBM-read kernel: grid (3 phases, num_hw tiles).
# ---------------------------------------------------------------------------
def _resident_kernel(x_ref, gamma_ref, beta_ref, o_ref,
                     slab_ref, sum_ref, mean_ref, var_ref, scale_ref, bias_ref,
                     *, hw_tile, hw_total, num_hw, count, act, ragged):
    phase = pl.program_id(0)
    t = pl.program_id(1)
    off = t * hw_tile
    if hw_tile % _LANE == 0:
        off = pl.multiple_of(off, _LANE)

    def _masked(v):  # zero out-of-bounds lanes of the (only) ragged tile
        lane = jax.lax.broadcasted_iota(jnp.int32, v.shape, 2)
        return jnp.where(lane + off < hw_total, v, 0.0)

    # --- phase 0: stream x from HBM once, stash to VMEM slab, channel sums.
    @pl.when(phase == 0)
    def _():
        @pl.when(t == 0)
        def _():
            sum_ref[...] = jnp.zeros_like(sum_ref)

        x = x_ref[...]
        slab_ref[:, :, pl.ds(off, hw_tile)] = x
        xf = x.astype(jnp.float32)

        def _add(v):
            sum_ref[...] += jnp.sum(v, axis=(0, 2), keepdims=True)

        if ragged:
            @pl.when(t < num_hw - 1)
            def _():
                _add(xf)

            @pl.when(t == num_hw - 1)
            def _():
                _add(_masked(xf))
        else:
            _add(xf)

    # --- phase 1: exact (second-pass) variance from the VMEM-resident slab.
    @pl.when(phase == 1)
    def _():
        @pl.when(t == 0)
        def _():
            mean_ref[...] = sum_ref[...] * jnp.float32(1.0 / count)
            var_ref[...] = jnp.zeros_like(var_ref)

        d = slab_ref[:, :, pl.ds(off, hw_tile)].astype(jnp.float32) - mean_ref[...]

        def _add(v):
            var_ref[...] += jnp.sum(v * v, axis=(0, 2), keepdims=True)

        if ragged:
            @pl.when(t < num_hw - 1)
            def _():
                _add(d)

            @pl.when(t == num_hw - 1)
            def _():
                _add(_masked(d))
        else:
            _add(d)

    # --- phase 2: y = x*scale + bias (+ activation), lane-dense HBM writes.
    @pl.when(phase == 2)
    def _():
        @pl.when(t == 0)
        def _():
            var = var_ref[...] * jnp.float32(1.0 / count)
            scale_ref[...] = gamma_ref[...] * jax.lax.rsqrt(var + EPS)
            bias_ref[...] = beta_ref[...] - mean_ref[...] * scale_ref[...]

        xf = slab_ref[:, :, pl.ds(off, hw_tile)].astype(jnp.float32)
        y = xf * scale_ref[...] + bias_ref[...]
        o_ref[...] = _act(y, act).astype(o_ref.dtype)


def _bn_act_resident(x3, gamma3, beta3, activation, hw_tile, num_hw, vmem_limit):
    N, C, HW = x3.shape
    dtype = x3.dtype
    kernel = functools.partial(
        _resident_kernel, hw_tile=hw_tile, hw_total=HW, num_hw=num_hw,
        count=N * HW, act=activation, ragged=(HW % hw_tile) != 0)
    return pl.pallas_call(
        kernel,
        out_shape=jax.ShapeDtypeStruct((N, C, HW), dtype),
        grid_spec=pltpu.PrefetchScalarGridSpec(
            num_scalar_prefetch=0,
            grid=(3, num_hw),
            in_specs=[
                # After phase 0 the index stops changing -> x is fetched from
                # HBM exactly once.
                pl.BlockSpec((N, C, hw_tile),
                             lambda p, t: (0, 0, jnp.where(p == 0, t, num_hw - 1))),
                pl.BlockSpec((1, C, 1), lambda p, t: (0, 0, 0)),
                pl.BlockSpec((1, C, 1), lambda p, t: (0, 0, 0)),
            ],
            # Output block index only advances during phase 2 -> exactly one
            # lane-dense HBM write per tile.
            out_specs=pl.BlockSpec((N, C, hw_tile),
                                   lambda p, t: (0, 0, jnp.where(p == 2, t, 0))),
            scratch_shapes=[
                pltpu.VMEM((N, C, num_hw * hw_tile), dtype),   # resident slab
                pltpu.VMEM((1, C, 1), jnp.float32),            # sum
                pltpu.VMEM((1, C, 1), jnp.float32),            # mean
                pltpu.VMEM((1, C, 1), jnp.float32),            # var
                pltpu.VMEM((1, C, 1), jnp.float32),            # scale
                pltpu.VMEM((1, C, 1), jnp.float32),            # bias
            ]),
        compiler_params=pltpu.CompilerParams(
            dimension_semantics=("arbitrary", "arbitrary"),
            vmem_limit_bytes=vmem_limit),
    )(x3, gamma3, beta3)


# ---------------------------------------------------------------------------
# Streaming pass 1: shifted partial sums / sums of squares per (n-block, s).
# ---------------------------------------------------------------------------
def _stats_kernel(x_ref, shift_ref, sum_ref, sq_ref,
                  *, hw_tile, hw_total, num_hw, num_hw_inner, split, ragged):
    s = pl.program_id(1)
    h = pl.program_id(2)
    g = s * num_hw_inner + h          # global HW-tile index (may exceed num_hw-1)

    @pl.when(h == 0)
    def _():
        sum_ref[...] = jnp.zeros_like(sum_ref)
        sq_ref[...] = jnp.zeros_like(sq_ref)

    # Shifted accumulation (x - shift) avoids E[x^2]-E[x]^2 cancellation.
    x = x_ref[...].astype(jnp.float32) - shift_ref[...]

    def _add(v):
        sum_ref[...] += jnp.sum(v, axis=(0, 2), keepdims=True)
        sq_ref[...] += jnp.sum(v * v, axis=(0, 2), keepdims=True)

    if not ragged and split == 1:
        _add(x)
    else:
        full_upper = num_hw - 1 if ragged else num_hw

        @pl.when(g < full_upper)           # full, in-bounds tiles
        def _():
            _add(x)

        if ragged:                          # masking only on the last tile
            @pl.when(g == num_hw - 1)
            def _():
                lane = jax.lax.broadcasted_iota(jnp.int32, x.shape, 2)
                _add(jnp.where(lane + g * hw_tile < hw_total, x, 0.0))
        # tiles with g >= num_hw (duplicate fetches from the HW split) are
        # simply not accumulated.


# ---------------------------------------------------------------------------
# Streaming pass 2: fold the scale/bias epilogue in-kernel, apply, activate.
# ---------------------------------------------------------------------------
def _apply_kernel(x_ref, psum_ref, psq_ref, shift_ref, gamma_ref, beta_ref,
                  o_ref, *, count, act):
    inv = jnp.float32(1.0 / count)
    s1 = jnp.sum(psum_ref[...], axis=0, keepdims=True) * inv    # E[x - shift]
    s2 = jnp.sum(psq_ref[...], axis=0, keepdims=True) * inv     # E[(x-shift)^2]
    var = jnp.maximum(s2 - s1 * s1, 0.0)
    mean = s1 + shift_ref[...]
    scale = gamma_ref[...] * jax.lax.rsqrt(var + EPS)
    bias = beta_ref[...] - mean * scale
    y = x_ref[...].astype(jnp.float32) * scale + bias
    o_ref[...] = _act(y, act).astype(o_ref.dtype)


# ---------------------------------------------------------------------------
# Public wrapper.
# ---------------------------------------------------------------------------
def bn_act(x_nchw, gamma, beta, *, activation="swish", force_two_pass=False,
           block_target_bytes=None):
    """BatchNorm2d (training-mode batch stats) + SiLU/ReLU.  x: (N, C, H, W)."""
    N, C, H, W = x_nchw.shape
    HW = H * W
    dtype = x_nchw.dtype
    itemsize = jnp.dtype(dtype).itemsize

    cap = _vmem_capacity_bytes()
    vmem_limit = int(min(cap * 3 // 4, 100 << 20))

    x3 = x_nchw.reshape(N, C, HW)                        # free view, no copy
    gamma3 = gamma.reshape(1, C, 1).astype(jnp.float32)
    beta3 = beta.reshape(1, C, 1).astype(jnp.float32)

    # ---- VMEM-resident single-HBM-read path -------------------------------
    if not force_two_pass:
        res_target = block_target_bytes or max(512 << 10,
                                               min(2 << 20, vmem_limit // 24))
        fits, hw_tile, num_hw = _resident_plan(N, C, HW, itemsize, cap,
                                               vmem_limit, res_target)
        if fits:
            y3 = _bn_act_resident(x3, gamma3, beta3, activation,
                                  hw_tile, num_hw, vmem_limit)
            return y3.reshape(N, C, H, W)

    # ---- streaming two-pass path ------------------------------------------
    target = block_target_bytes or max(1 << 20, min(8 << 20, vmem_limit // 12))
    nb, num_nb, hw_tile, num_hw, split = _two_pass_plan(N, C, HW, itemsize,
                                                        target)
    num_hw_inner = -(-num_hw // split)
    ragged = (HW % hw_tile) != 0

    # Per-channel shift (any in-distribution value) for numerically robust
    # variance; a C-element HBM gather, negligible traffic.
    shift = x3[:1, :, :1].astype(jnp.float32)

    # Pass 1: per-(n-block, hw-split) partial sums.  N axis is parallel; an
    # extra parallel HW split keeps both v7x TensorCores busy when N == 1.
    psum, psq = pl.pallas_call(
        functools.partial(_stats_kernel, hw_tile=hw_tile, hw_total=HW,
                          num_hw=num_hw, num_hw_inner=num_hw_inner,
                          split=split, ragged=ragged),
        out_shape=(jax.ShapeDtypeStruct((num_nb * split, C, 1), jnp.float32),
                   jax.ShapeDtypeStruct((num_nb * split, C, 1), jnp.float32)),
        grid_spec=pltpu.PrefetchScalarGridSpec(
            num_scalar_prefetch=0,
            grid=(num_nb, split, num_hw_inner),
            in_specs=[
                pl.BlockSpec(
                    (nb, C, hw_tile),
                    lambda n, s, h: (n, 0,
                                     jnp.minimum(s * num_hw_inner + h,
                                                 num_hw - 1))),
                pl.BlockSpec((1, C, 1), lambda n, s, h: (0, 0, 0)),
            ],
            out_specs=(pl.BlockSpec((1, C, 1),
                                    lambda n, s, h: (n * split + s, 0, 0)),
                       pl.BlockSpec((1, C, 1),
                                    lambda n, s, h: (n * split + s, 0, 0))),
        ),
        compiler_params=pltpu.CompilerParams(
            dimension_semantics=("parallel", "parallel", "arbitrary"),
            vmem_limit_bytes=vmem_limit),
    )(x3, shift)

    # Pass 2: normalize + activation with big lane-dense tiles; the tiny
    # mean/var/scale/bias epilogue is folded in-kernel (no micro XLA kernels
    # between the two pallas_calls).
    y3 = pl.pallas_call(
        functools.partial(_apply_kernel, count=N * HW, act=activation),
        out_shape=jax.ShapeDtypeStruct((N, C, HW), dtype),
        grid_spec=pltpu.PrefetchScalarGridSpec(
            num_scalar_prefetch=0,
            grid=(num_nb, num_hw),
            in_specs=[
                pl.BlockSpec((nb, C, hw_tile), lambda n, h: (n, 0, h)),
                pl.BlockSpec((num_nb * split, C, 1), lambda n, h: (0, 0, 0)),
                pl.BlockSpec((num_nb * split, C, 1), lambda n, h: (0, 0, 0)),
                pl.BlockSpec((1, C, 1), lambda n, h: (0, 0, 0)),
                pl.BlockSpec((1, C, 1), lambda n, h: (0, 0, 0)),
                pl.BlockSpec((1, C, 1), lambda n, h: (0, 0, 0)),
            ],
            out_specs=pl.BlockSpec((nb, C, hw_tile), lambda n, h: (n, 0, h)),
        ),
        compiler_params=pltpu.CompilerParams(
            dimension_semantics=("parallel", "parallel"),
            vmem_limit_bytes=vmem_limit),
    )(x3, psum, psq, shift, gamma3, beta3)
    return y3.reshape(N, C, H, W)


if __name__ == "__main__":
    key = jax.random.PRNGKey(0)
    N, C, H, W = 2, 4, 16, 16
    x = jax.random.normal(key, (N, C, H, W), dtype=jnp.float32)

    # PyTorch BatchNorm2d default affine init.
    gamma = jnp.ones((C,), jnp.float32)
    beta = jnp.zeros((C,), jnp.float32)

    def ref_bn(xx, g, b, act="swish"):
        xx = xx.astype(jnp.float32)
        mean = jnp.mean(xx, axis=(0, 2, 3), keepdims=True)
        var = jnp.var(xx, axis=(0, 2, 3), keepdims=True)
        y = (xx - mean) / jnp.sqrt(var + EPS)
        y = y * g.reshape(1, -1, 1, 1) + b.reshape(1, -1, 1, 1)
        return jnp.maximum(y, 0.0) if act == "relu" else y * jax.nn.sigmoid(y)

    # 1. VMEM-resident single-HBM-read path (default).
    out = jax.block_until_ready(bn_act(x, gamma, beta))
    assert jnp.allclose(out, ref_bn(x, gamma, beta), atol=1e-4, rtol=1e-4)

    # 2. Streaming two-pass path on the same input.
    out2 = jax.block_until_ready(bn_act(x, gamma, beta, force_two_pass=True))
    assert jnp.allclose(out2, ref_bn(x, gamma, beta), atol=1e-4, rtol=1e-4)

    # 3. Resident path with multiple ragged HW tiles (tiny block override).
    x2 = jax.random.normal(jax.random.PRNGKey(1), (2, 4, 20, 20), jnp.float32)
    g2 = jnp.linspace(0.5, 1.5, C, dtype=jnp.float32)
    b2 = jnp.linspace(-0.3, 0.3, C, dtype=jnp.float32)
    out3 = jax.block_until_ready(bn_act(x2, g2, b2, block_target_bytes=4096))
    assert jnp.allclose(out3, ref_bn(x2, g2, b2), atol=1e-4, rtol=1e-4)

    # 4. Two-pass path with ragged lane tiles (nb=1, tiled H*W).
    out4 = jax.block_until_ready(
        bn_act(x2, g2, b2, force_two_pass=True, block_target_bytes=4096))
    assert jnp.allclose(out4, ref_bn(x2, g2, b2), atol=1e-4, rtol=1e-4)

    # 5. Two-pass path with N == 1: exercises the parallel HW split (S=2).
    x5 = jax.random.normal(jax.random.PRNGKey(2), (1, 4, 20, 20), jnp.float32)
    out5 = jax.block_until_ready(
        bn_act(x5, g2, b2, force_two_pass=True, block_target_bytes=4096))
    assert jnp.allclose(out5, ref_bn(x5, g2, b2), atol=1e-4, rtol=1e-4)

    # 6. ReLU variant (module's activation='relu' branch).
    out6 = jax.block_until_ready(bn_act(x, gamma, beta, activation="relu"))
    assert jnp.allclose(out6, ref_bn(x, gamma, beta, act="relu"),
                        atol=1e-4, rtol=1e-4)

    # 7. bf16 input: native-itemsize tiling, f32 statistics.
    xb = x.astype(jnp.bfloat16)
    out7 = jax.block_until_ready(bn_act(xb, gamma, beta))
    assert jnp.allclose(out7.astype(jnp.float32), ref_bn(xb, gamma, beta),
                        atol=3e-2, rtol=3e-2)

    print("KERNEL_OK")
</pallas_src>

<mosaic_0001>
module attributes {stable_mosaic.version = 11 : i64} {
  func.func @_resident_kernel(%arg0: i32, %arg1: i32, %arg2: memref<2x4x256xf32, #tpu.memory_space<vmem>>, %arg3: memref<1x4x1xf32, #tpu.memory_space<vmem>>, %arg4: memref<1x4x1xf32, #tpu.memory_space<vmem>>, %arg5: memref<2x4x256xf32, #tpu.memory_space<vmem>>, %arg6: memref<2x4x256xf32, #tpu.memory_space<vmem>>, %arg7: memref<1x4x1xf32, #tpu.memory_space<vmem>>, %arg8: memref<1x4x1xf32, #tpu.memory_space<vmem>>, %arg9: memref<1x4x1xf32, #tpu.memory_space<vmem>>, %arg10: memref<1x4x1xf32, #tpu.memory_space<vmem>>, %arg11: memref<1x4x1xf32, #tpu.memory_space<vmem>>) attributes {dimension_semantics = [#tpu.dimension_semantics<arbitrary>, #tpu.dimension_semantics<arbitrary>], iteration_bounds = array<i64: 3, 1>, scalar_prefetch = 0 : i64, scratch_operands = 6 : i64, tpu.core_type = #tpu.core_type<tc>, window_params = [{transform_indices = @transform_0, window_bounds = array<i64: 2, 4, 256>}, {pipeline_mode = #tpu.pipeline_mode<synchronous>, transform_indices = @transform_1, window_bounds = array<i64: 1, 4, 1>}, {pipeline_mode = #tpu.pipeline_mode<synchronous>, transform_indices = @transform_2, window_bounds = array<i64: 1, 4, 1>}, {transform_indices = @transform_3, window_bounds = array<i64: 2, 4, 256>}]} {
    %c256_i32 = arith.constant 256 : i32
    %0 = arith.muli %arg1, %c256_i32 : i32
    %1 = tpu.assume_multiple %0, 128 : i32
    %c0_i32 = arith.constant 0 : i32
    %2 = arith.cmpi eq, %arg0, %c0_i32 : i32
    %3 = arith.extui %2 : i1 to i32
    %c0_i32_0 = arith.constant 0 : i32
    %4 = arith.cmpi ne, %3, %c0_i32_0 : i32
    scf.if %4 {
      %c0_i32_3 = arith.constant 0 : i32
      %11 = arith.cmpi eq, %arg1, %c0_i32_3 : i32
      %12 = arith.extui %11 : i1 to i32
      %c0_i32_4 = arith.constant 0 : i32
      %13 = arith.cmpi ne, %12, %c0_i32_4 : i32
      scf.if %13 {
        %cst_15 = arith.constant 0.000000e+00 : f32
        %22 = vector.broadcast %cst_15 : f32 to vector<1x4x1xf32>
        %c0_16 = arith.constant 0 : index
        %c0_17 = arith.constant 0 : index
        %c0_18 = arith.constant 0 : index
        %23 = vector.load %arg7[%c0_16, %c0_17, %c0_18] : memref<1x4x1xf32, #tpu.memory_space<vmem>>, vector<1x4x1xf32>
        tpu.vector_store %arg7[%c0_16, %c0_17, %c0_18], %22 {strides = array<i32>} : memref<1x4x1xf32, #tpu.memory_space<vmem>>, vector<1x4x1xf32>,
      } else {
      }
      %c0 = arith.constant 0 : index
      %c0_5 = arith.constant 0 : index
      %c0_6 = arith.constant 0 : index
      %14 = vector.load %arg2[%c0, %c0_5, %c0_6] : memref<2x4x256xf32, #tpu.memory_space<vmem>>, vector<2x4x256xf32>
      %c0_7 = arith.constant 0 : index
      %c0_8 = arith.constant 0 : index
      %15 = arith.index_cast %1 : i32 to index
      %16 = vector.load %arg6[%c0_7, %c0_8, %15] : memref<2x4x256xf32, #tpu.memory_space<vmem>>, vector<2x4x256xf32>
      tpu.vector_store %arg6[%c0_7, %c0_8, %15], %14 {strides = array<i32>} : memref<2x4x256xf32, #tpu.memory_space<vmem>>, vector<2x4x256xf32>,
      %c0_9 = arith.constant 0 : index
      %c0_10 = arith.constant 0 : index
      %c0_11 = arith.constant 0 : index
      %17 = vector.load %arg7[%c0_9, %c0_10, %c0_11] : memref<1x4x1xf32, #tpu.memory_space<vmem>>, vector<1x4x1xf32>
      %cst = arith.constant dense<0.000000e+00> : vector<4xf32>
      %18 = vector.multi_reduction <add>, %14, %cst [0, 2] : vector<2x4x256xf32> to vector<4xf32>
      %19 = vector.shape_cast %18 : vector<4xf32> to vector<1x4x1xf32>
      %20 = arith.addf %17, %19 : vector<1x4x1xf32>
      %c0_12 = arith.constant 0 : index
      %c0_13 = arith.constant 0 : index
      %c0_14 = arith.constant 0 : index
      %21 = vector.load %arg7[%c0_12, %c0_13, %c0_14] : memref<1x4x1xf32, #tpu.memory_space<vmem>>, vector<1x4x1xf32>
      tpu.vector_store %arg7[%c0_12, %c0_13, %c0_14], %20 {strides = array<i32>} : memref<1x4x1xf32, #tpu.memory_space<vmem>>, vector<1x4x1xf32>,
    } else {
    }
    %c1_i32 = arith.constant 1 : i32
    %5 = arith.cmpi eq, %arg0, %c1_i32 : i32
    %6 = arith.extui %5 : i1 to i32
    %c0_i32_1 = arith.constant 0 : i32
    %7 = arith.cmpi ne, %6, %c0_i32_1 : i32
    scf.if %7 {
      %c0_i32_3 = arith.constant 0 : i32
      %11 = arith.cmpi eq, %arg1, %c0_i32_3 : i32
      %12 = arith.extui %11 : i1 to i32
      %c0_i32_4 = arith.constant 0 : i32
      %13 = arith.cmpi ne, %12, %c0_i32_4 : i32
      scf.if %13 {
        %c0_15 = arith.constant 0 : index
        %c0_16 = arith.constant 0 : index
        %c0_17 = arith.constant 0 : index
        %25 = vector.load %arg7[%c0_15, %c0_16, %c0_17] : memref<1x4x1xf32, #tpu.memory_space<vmem>>, vector<1x4x1xf32>
        %cst_18 = arith.constant 0.001953125 : f32
        %26 = vector.broadcast %cst_18 : f32 to vector<1x4x1xf32>
        %27 = arith.mulf %25, %26 : vector<1x4x1xf32>
        %c0_19 = arith.constant 0 : index
        %c0_20 = arith.constant 0 : index
        %c0_21 = arith.constant 0 : index
        %28 = vector.load %arg8[%c0_19, %c0_20, %c0_21] : memref<1x4x1xf32, #tpu.memory_space<vmem>>, vector<1x4x1xf32>
        tpu.vector_store %arg8[%c0_19, %c0_20, %c0_21], %27 {strides = array<i32>} : memref<1x4x1xf32, #tpu.memory_space<vmem>>, vector<1x4x1xf32>,
        %cst_22 = arith.constant 0.000000e+00 : f32
        %29 = vector.broadcast %cst_22 : f32 to vector<1x4x1xf32>
        %c0_23 = arith.constant 0 : index
        %c0_24 = arith.constant 0 : index
        %c0_25 = arith.constant 0 : index
        %30 = vector.load %arg9[%c0_23, %c0_24, %c0_25] : memref<1x4x1xf32, #tpu.memory_space<vmem>>, vector<1x4x1xf32>
        tpu.vector_store %arg9[%c0_23, %c0_24, %c0_25], %29 {strides = array<i32>} : memref<1x4x1xf32, #tpu.memory_space<vmem>>, vector<1x4x1xf32>,
      } else {
      }
      %c0 = arith.constant 0 : index
      %c0_5 = arith.constant 0 : index
      %14 = arith.index_cast %1 : i32 to index
      %15 = vector.load %arg6[%c0, %c0_5, %14] : memref<2x4x256xf32, #tpu.memory_space<vmem>>, vector<2x4x256xf32>
      %c0_6 = arith.constant 0 : index
      %c0_7 = arith.constant 0 : index
      %c0_8 = arith.constant 0 : index
      %16 = vector.load %arg8[%c0_6, %c0_7, %c0_8] : memref<1x4x1xf32, #tpu.memory_space<vmem>>, vector<1x4x1xf32>
      %17 = vector.broadcast %16 : vector<1x4x1xf32> to vector<2x4x256xf32>
      %18 = arith.subf %15, %17 : vector<2x4x256xf32>
      %c0_9 = arith.constant 0 : index
      %c0_10 = arith.constant 0 : index
      %c0_11 = arith.constant 0 : index
      %19 = vector.load %arg9[%c0_9, %c0_10, %c0_11] : memref<1x4x1xf32, #tpu.memory_space<vmem>>, vector<1x4x1xf32>
      %20 = arith.mulf %18, %18 : vector<2x4x256xf32>
      %cst = arith.constant dense<0.000000e+00> : vector<4xf32>
      %21 = vector.multi_reduction <add>, %20, %cst [0, 2] : vector<2x4x256xf32> to vector<4xf32>
      %22 = vector.shape_cast %21 : vector<4xf32> to vector<1x4x1xf32>
      %23 = arith.addf %19, %22 : vector<1x4x1xf32>
      %c0_12 = arith.constant 0 : index
      %c0_13 = arith.constant 0 : index
      %c0_14 = arith.constant 0 : index
      %24 = vector.load %arg9[%c0_12, %c0_13, %c0_14] : memref<1x4x1xf32, #tpu.memory_space<vmem>>, vector<1x4x1xf32>
      tpu.vector_store %arg9[%c0_12, %c0_13, %c0_14], %23 {strides = array<i32>} : memref<1x4x1xf32, #tpu.memory_space<vmem>>, vector<1x4x1xf32>,
    } else {
    }
    %c2_i32 = arith.constant 2 : i32
    %8 = arith.cmpi eq, %arg0, %c2_i32 : i32
    %9 = arith.extui %8 : i1 to i32
    %c0_i32_2 = arith.constant 0 : i32
    %10 = arith.cmpi ne, %9, %c0_i32_2 : i32
    scf.if %10 {
      %c0_i32_3 = arith.constant 0 : i32
      %11 = arith.cmpi eq, %arg1, %c0_i32_3 : i32
      %12 = arith.extui %11 : i1 to i32
      %c0_i32_4 = arith.constant 0 : i32
      %13 = arith.cmpi ne, %12, %c0_i32_4 : i32
      scf.if %13 {
        %c0_15 = arith.constant 0 : index
        %c0_16 = arith.constant 0 : index
        %c0_17 = arith.constant 0 : index
        %29 = vector.load %arg9[%c0_15, %c0_16, %c0_17] : memref<1x4x1xf32, #tpu.memory_space<vmem>>, vector<1x4x1xf32>
        %cst_18 = arith.constant 0.001953125 : f32
        %30 = vector.broadcast %cst_18 : f32 to vector<1x4x1xf32>
        %31 = arith.mulf %29, %30 : vector<1x4x1xf32>
        %c0_19 = arith.constant 0 : index
        %c0_20 = arith.constant 0 : index
        %c0_21 = arith.constant 0 : index
        %32 = vector.load %arg3[%c0_19, %c0_20, %c0_21] : memref<1x4x1xf32, #tpu.memory_space<vmem>>, vector<1x4x1xf32>
        %cst_22 = arith.constant 9.99999974E-6 : f32
        %33 = vector.broadcast %cst_22 : f32 to vector<1x4x1xf32>
        %34 = arith.addf %31, %33 : vector<1x4x1xf32>
        %35 = math.rsqrt %34 : vector<1x4x1xf32>
        %36 = arith.mulf %32, %35 : vector<1x4x1xf32>
        %c0_23 = arith.constant 0 : index
        %c0_24 = arith.constant 0 : index
        %c0_25 = arith.constant 0 : index
        %37 = vector.load %arg10[%c0_23, %c0_24, %c0_25] : memref<1x4x1xf32, #tpu.memory_space<vmem>>, vector<1x4x1xf32>
        tpu.vector_store %arg10[%c0_23, %c0_24, %c0_25], %36 {strides = array<i32>} : memref<1x4x1xf32, #tpu.memory_space<vmem>>, vector<1x4x1xf32>,
        %c0_26 = arith.constant 0 : index
        %c0_27 = arith.constant 0 : index
        %c0_28 = arith.constant 0 : index
        %38 = vector.load %arg4[%c0_26, %c0_27, %c0_28] : memref<1x4x1xf32, #tpu.memory_space<vmem>>, vector<1x4x1xf32>
        %c0_29 = arith.constant 0 : index
        %c0_30 = arith.constant 0 : index
        %c0_31 = arith.constant 0 : index
        %39 = vector.load %arg8[%c0_29, %c0_30, %c0_31] : memref<1x4x1xf32, #tpu.memory_space<vmem>>, vector<1x4x1xf32>
        %c0_32 = arith.constant 0 : index
        %c0_33 = arith.constant 0 : index
        %c0_34 = arith.constant 0 : index
        %40 = vector.load %arg10[%c0_32, %c0_33, %c0_34] : memref<1x4x1xf32, #tpu.memory_space<vmem>>, vector<1x4x1xf32>
        %41 = arith.mulf %39, %40 : vector<1x4x1xf32>
        %42 = arith.subf %38, %41 : vector<1x4x1xf32>
        %c0_35 = arith.constant 0 : index
        %c0_36 = arith.constant 0 : index
        %c0_37 = arith.constant 0 : index
        %43 = vector.load %arg11[%c0_35, %c0_36, %c0_37] : memref<1x4x1xf32, #tpu.memory_space<vmem>>, vector<1x4x1xf32>
        tpu.vector_store %arg11[%c0_35, %c0_36, %c0_37], %42 {strides = array<i32>} : memref<1x4x1xf32, #tpu.memory_space<vmem>>, vector<1x4x1xf32>,
      } else {
      }
      %c0 = arith.constant 0 : index
      %c0_5 = arith.constant 0 : index
      %14 = arith.index_cast %1 : i32 to index
      %15 = vector.load %arg6[%c0, %c0_5, %14] : memref<2x4x256xf32, #tpu.memory_space<vmem>>, vector<2x4x256xf32>
      %c0_6 = arith.constant 0 : index
      %c0_7 = arith.constant 0 : index
      %c0_8 = arith.constant 0 : index
      %16 = vector.load %arg10[%c0_6, %c0_7, %c0_8] : memref<1x4x1xf32, #tpu.memory_space<vmem>>, vector<1x4x1xf32>
      %17 = vector.broadcast %16 : vector<1x4x1xf32> to vector<2x4x256xf32>
      %18 = arith.mulf %15, %17 : vector<2x4x256xf32>
      %c0_9 = arith.constant 0 : index
      %c0_10 = arith.constant 0 : index
      %c0_11 = arith.constant 0 : index
      %19 = vector.load %arg11[%c0_9, %c0_10, %c0_11] : memref<1x4x1xf32, #tpu.memory_space<vmem>>, vector<1x4x1xf32>
      %20 = vector.broadcast %19 : vector<1x4x1xf32> to vector<2x4x256xf32>
      %21 = arith.addf %18, %20 : vector<2x4x256xf32>
      %22 = arith.negf %21 : vector<2x4x256xf32>
      %23 = math.exp %22 : vector<2x4x256xf32>
      %cst = arith.constant 1.000000e+00 : f32
      %24 = vector.broadcast %cst : f32 to vector<2x4x256xf32>
      %25 = arith.addf %24, %23 : vector<2x4x256xf32>
      %26 = arith.divf %24, %25 : vector<2x4x256xf32>
      %27 = arith.mulf %21, %26 : vector<2x4x256xf32>
      %c0_12 = arith.constant 0 : index
      %c0_13 = arith.constant 0 : index
      %c0_14 = arith.constant 0 : index
      %28 = vector.load %arg5[%c0_12, %c0_13, %c0_14] : memref<2x4x256xf32, #tpu.memory_space<vmem>>, vector<2x4x256xf32>
      tpu.vector_store %arg5[%c0_12, %c0_13, %c0_14], %27 {strides = array<i32>} : memref<2x4x256xf32, #tpu.memory_space<vmem>>, vector<2x4x256xf32>,
    } else {
    }
    return
  }
  func.func @transform_0(%arg0: i32, %arg1: i32) -> (i32, i32, i32) {
    %c0_i32 = arith.constant 0 : i32
    %0 = arith.cmpi eq, %arg0, %c0_i32 : i32
    %c0_i32_0 = arith.constant 0 : i32
    %1 = arith.select %0, %arg1, %c0_i32_0 : i32
    %c0_i32_1 = arith.constant 0 : i32
    %c0_i32_2 = arith.constant 0 : i32
    %c0_i32_3 = arith.constant 0 : i32
    return %c0_i32_1, %c0_i32_2, %1 : i32, i32, i32
  }
  func.func @transform_1(%arg0: i32, %arg1: i32) -> (i32, i32, i32) {
    %c0_i32 = arith.constant 0 : i32
    %c0_i32_0 = arith.constant 0 : i32
    %c0_i32_1 = arith.constant 0 : i32
    %c0_i32_2 = arith.constant 0 : i32
    return %c0_i32, %c0_i32_0, %c0_i32_1 : i32, i32, i32
  }
  func.func @transform_2(%arg0: i32, %arg1: i32) -> (i32, i32, i32) {
    %c0_i32 = arith.constant 0 : i32
    %c0_i32_0 = arith.constant 0 : i32
    %c0_i32_1 = arith.constant 0 : i32
    %c0_i32_2 = arith.constant 0 : i32
    return %c0_i32, %c0_i32_0, %c0_i32_1 : i32, i32, i32
  }
  func.func @transform_3(%arg0: i32, %arg1: i32) -> (i32, i32, i32) {
    %c2_i32 = arith.constant 2 : i32
    %0 = arith.cmpi eq, %arg0, %c2_i32 : i32
    %c0_i32 = arith.constant 0 : i32
    %1 = arith.select %0, %arg1, %c0_i32 : i32
    %c0_i32_0 = arith.constant 0 : i32
    %c0_i32_1 = arith.constant 0 : i32
    %c0_i32_2 = arith.constant 0 : i32
    return %c0_i32_0, %c0_i32_1, %1 : i32, i32, i32
  }
}

</mosaic_0001>

<bundles_post_ra>
// kernel: tpu_custom_call.1
= control target key start
LH: loop header
LB: loop body
LE: loop exit
PB: predicated region body
PF: predicated region fallthrough
CT: control target
= control target key end

     0   :  { %8 = vsyncpa [#allocation9], 0  ;;  %s769_s0 = inlined_call_operand.hbm [shape: f32[2,4,256], index: 0, kind: input, shape index: {}]   ;;  %s770_s1 = inlined_call_operand.vmem [shape: f32[1,4,1], index: 1, kind: input, shape index: {}]   ;;  %s771_s2 = inlined_call_operand.vmem [shape: f32[1,4,1], index: 2, kind: input, shape index: {}]   ;;  %s772_s3 = inlined_call_operand.hbm [shape: f32[2,4,256], index: 3, kind: output, shape index: {}]  }
   0x1   :  { %10 = vsyncpa [#allocation9 + $0x1], 0 }
   0x2   :  { %11 = vsyncpa [#allocation10], 0 }
   0x3   :  { %13 = vsyncpa [#allocation10 + $0x1], 0  ;;  %s691_s12 = smov 0   ;;  %s693_s13 = smov 0  }
   0x4   :  { %s695_s14 = smov 0  }
   0x5 LB: > { %s489_s15 = sadd.s32 4294967295, %s657_s14   ;;  %s490_s16 = sadd.s32 4294967294, %s657_s14   ;;  %s657_s14 = sphi %s695_s14, %s19_s14   ;;  %s653_s13 = sphi %s693_s13, %s776_s13   ;;  %s649_s12 = sphi %s691_s12, %s775_s12  }
   0x6   : > { %s31_s17 = sadd.s32 1, %s653_s13  ;;  %p521_p1 = scmp.lt.s32.totalorder %s657_s14, 3 }
   0x7   : > { %p33_p0 = scmp.ge.s32.totalorder %s31_s17, 3  ;;  %p522_p2 = scmp.eq.s32.totalorder %s657_s14, 0 }
   0x8   : > { %s659_s19 = smov [#allocation8]   ;;  %p494_p4 = scmp.ge.s32.totalorder %s657_s14, 1 }
   0x9   : > { %s778_s17 = smov (%p33_p0, %s31_s17), 0  ;;  %p713_p3 = pnand %p522_p2, %p521_p1 }
   0xa   : > { %s170_s20 = sshll.u32 %s659_s19, 4  ;;  %s171_s20 = int_to_ptr.vmem [resolvable:$true] %s170_s20 }
   0xb   : > { %p579_p5 = pneg %p713_p3  ;;  %s588_s21 = scalar_lea.vmem %s171_s20, 256 }
   0xc   : > { %p589_p6 = scmp.ne.s32.totalorder %s171_s20, %s588_s21  ;;  %s595_s22 = scalar_lea.vmem %s171_s20, 512 }
   0xd   : > { %p596_p9 = scmp.lt.s32.totalorder %s171_s20, %s171_s20  ;;  %p597_p10 = scmp.lt.s32.totalorder %s595_s22, %s588_s21 }
   0xe   : > { %p591_p7 = pnand %p589_p6, %p579_p5 }
   0xf   : > { %p598_p11 = por %p597_p10, %p596_p9 }
  0x10   : > { %p592_p8 = pneg %p591_p7 }
  0x12   : > { %p599_p12 = pnand %p598_p11, %p592_p8 }
  0x14   : > { %602 = shalt.err (!%p599_p12)
}
  0x15   : > { %s660_s23 = smov 128   ;;  %s661_s24 = smov 8  }
  0x16   : > { %516 = dma.hbm_to_vmem [thread:$0]  (!%p713_p3), %s769_s0, 256, %s171_s20, [#allocation9], %s660_s23, %s660_s23, %s661_s24  }
  0x17   : > { %p178_p13 = scmp.lt.s32.totalorder %s657_s14, 4 }
  0x19   : > { %p179_p0 = pnand %p494_p4, %p178_p13 }
  0x1a   : > { %p523_p1 = scmp.eq.s32.totalorder (!%p179_p0), %s489_s15, 0 }
  0x1b   : > { %182 = sbr.rel (%p179_p0) target bundleno = 716 (0x2cc), region = 32 }
  0x20   : > { %640 = dma.done.wait (%p523_p1), [#allocation9], 256  }
  0x21   : > { %642 = vsyncadd (%p523_p1), [#allocation9], 4294967040  ;;  %p496_p2 = scmp.ne.s32.totalorder %s649_s12, 0 }
  0x23   : > { %221 = sbr.rel (%p496_p2) target bundleno = 191 (0xbf), region = 40 }
  0x28   : > { %v228_v0 = vld [vmem:[#allocation8] sm:$0xff]  ;;  %v229_v1 = vld [vmem:[#allocation8 + $0x8] sm:$0xff]  ;;  %vm243_vm0 = vcmask 1043456   ;;  %vm226_vm1 = vcmask 3072   ;;  %v662_v5 = vmov 0.0  }
  0x29   : > { %234 = vst [vmem:[#allocation2] sm:$0xff] %v228_v0  ;;  %235 = vst [vmem:[#allocation2 + $0x8] sm:$0xff] %v229_v1  ;;  %v239_v2 = vcombine.high %v228_v0, %v228_v0  ;;  %v240_v3 = vcombine.high %v229_v1, %v229_v1  ;;  %v244_v4 = vsel %vm243_vm0, %v228_v0, 0.0  ;;  %v247_v7 = vsel %vm243_vm0, %v229_v1, 0.0 }
  0x2a   : > { %227 = vst.msk [vmem:[#allocation3] sm:$0xf] %vm226_vm1, %v662_v5 }
  0x2b   : > { %v245_v6 = vsel %vm243_vm0, %v239_v2, 0.0  ;;  %v249_v9 = vsel %vm243_vm0, %v240_v3, 0.0 }
  0x2c   : > { %v246_v8 = vadd.f32 %v245_v6, %v244_v4 }
  0x2e   : > { %v248_v10 = vadd.f32 %v247_v7, %v246_v8 }
  0x30   : > { %v250_v11 = vadd.f32 %v249_v9, %v248_v10 }
  0x31   : > { %v236_v12 = vld [vmem:[#allocation3] sm:$0xf] }
  0x32   : > { %251 = vadd.xlane.f32.xlu0 %v250_v11 }
  0xbb   : > { %v252_v13 = vpop.xlane.xlu0 %251 }
  0xbc   : > { %v253_v14 = vadd.f32 %v252_v13, %v236_v12 }
  0xbe   : > { %255 = vst.msk [vmem:[#allocation3] sm:$0xf] %vm226_vm1, %v253_v14 }
  0xbf PF: > { %p497_p3 = scmp.ne.s32.totalorder %s649_s12, 1 }
  0xc1   : > { %259 = sbr.rel (%p497_p3) target bundleno = 489 (0x1e9), region = 48 }
  0xc6   : > { %v264_v15 = vld [vmem:[#allocation3] sm:$0xf]  ;;  %vm266_vm2 = vcmask 3072   ;;  %v663_v16 = vmov 0   ;;  %v664_v19 = vmov 0.0   ;;  %v283_v22 = vlaneseq  ;;  %v273_v26 = vld [vmem:[#allocation2] sm:$0xff] }
  0xc7   : > { %565 = vset.pattern.permute.xlu0 %v663_v16  ;;  %v265_v17 = vmul.f32 0.001953125, %v264_v15  ;;  %268 = vst.msk [vmem:[#allocation5] sm:$0xf] %vm266_vm2, %v664_v19  ;;  %v665_v20 = vmov 839922192   ;;  %v274_v27 = vld [vmem:[#allocation2 + $0x8] sm:$0xff] }
  0xc8   : > { %v281_v21 = vunpack.c.l.s4 %v665_v20  ;;  %v284_v24 = vshrl.u32 %v283_v22, 7  ;;  %vm299_vm3 = vcmask 1043456  }
  0xc9   : > { %267 = vst.msk [vmem:[#allocation4] sm:$0xf] %vm266_vm2, %v265_v17 }
  0xca   : > { %v282_v23 = vunpack.c.0.s8 %v281_v21 }
  0xcc   : > { %v285_v25 = vsub.s32 %v282_v23, %v284_v24 }
  0xce   : > { %v290_v43 = vld [vmem:[#allocation5] sm:$0xf] }
  0xd0   : > { %v275_v18 = vld [vmem:[#allocation4] sm:$0xf] }
  0xd1   : > { %278 = vperm.xlu0 %565, %v275_v18  }
 0x14c   : > { %v279_v28 = vpop.permute.xlu0 %278 }
 0x14d   : > { %v286_v29 = vrot.slane %v279_v28, %v285_v25 }
 0x14f   : > { %v288_v30 = vsub.f32 %v273_v26, %v286_v29  ;;  %v289_v31 = vsub.f32 %v274_v27, %v286_v29 }
 0x151   : > { %v291_v32 = vmul.f32 %v288_v30, %v288_v30  ;;  %v292_v33 = vmul.f32 %v289_v31, %v289_v31 }
 0x153   : > { %v295_v34 = vcombine.high %v291_v32, %v291_v32  ;;  %v300_v35 = vsel %vm299_vm3, %v291_v32, 0.0  ;;  %v296_v36 = vcombine.high %v292_v33, %v292_v33  ;;  %v303_v39 = vsel %vm299_vm3, %v292_v33, 0.0 }
 0x155   : > { %v301_v37 = vsel %vm299_vm3, %v295_v34, 0.0  ;;  %v305_v41 = vsel %vm299_vm3, %v296_v36, 0.0 }
 0x156   : > { %v302_v38 = vadd.f32 %v301_v37, %v300_v35 }
 0x158   : > { %v304_v40 = vadd.f32 %v303_v39, %v302_v38 }
 0x15a   : > { %v306_v42 = vadd.f32 %v305_v41, %v304_v40 }
 0x15c   : > { %307 = vadd.xlane.f32.xlu0 %v306_v42 }
 0x1e5   : > { %v308_v44 = vpop.xlane.xlu0 %307 }
 0x1e6   : > { %v309_v45 = vadd.f32 %v308_v44, %v290_v43 }
 0x1e8   : > { %311 = vst.msk [vmem:[#allocation5] sm:$0xf] %vm266_vm2, %v309_v45 }
 0x1e9 PF: > { %p498_p4 = scmp.ne.s32.totalorder %s649_s12, 2 }
 0x1eb   : > { %315 = sbr.rel (%p498_p4) target bundleno = 702 (0x2be), region = 56 }
 0x1f0   : > { %v320_v46 = vld [vmem:[#allocation5] sm:$0xf]  ;;  %v666_v47 = vmov 0   ;;  %v322_v50 = vld [vmem:[%s770_s1] sm:$0xf]  ;;  %vm326_vm4 = vcmask 3072   ;;  %v348_v62 = vlaneseq }
 0x1f1   : > { %566 = vset.pattern.permute.xlu0 %v666_v47  ;;  %v321_v48 = vmul.f32 0.001953125, %v320_v46  ;;  %v329_v53 = vld [vmem:[#allocation4] sm:$0xf]  ;;  %v328_v55 = vld [vmem:[%s771_s2] sm:$0xf]  ;;  %v339_v5 = vld [vmem:[#allocation2 + $0x8] sm:$0xff] }
 0x1f2   : > { %v667_v60 = vmov 839922192   ;;  %v349_v0 = vshrl.u32 %v348_v62, 7  ;;  %v338_v4 = vld [vmem:[#allocation2] sm:$0xff] }
 0x1f3   : > { %v323_v49 = vadd.f32 1e-05, %v321_v48  ;;  %v346_v61 = vunpack.c.l.s4 %v667_v60 }
 0x1f5   : > { %567 = vrsqrt.f32 %v323_v49  ;;  %v347_v63 = vunpack.c.0.s8 %v346_v61 }
 0x1f7   : > { %v350_v1 = vsub.s32 %v347_v63, %v349_v0 }
 0x202   : > { %v568_v51 = vpop.eup %567 }
 0x203   : > { %v325_v52 = vmul.f32 %v568_v51, %v322_v50 }
 0x205   : > { %327 = vst.msk [vmem:[#allocation6] sm:$0xf] %vm326_vm4, %v325_v52 }
 0x20c   : > { %v340_v54 = vld [vmem:[#allocation6] sm:$0xf] }
 0x20d   : > { %v330_v56 = vld [vmem:[#allocation6] sm:$0xf]  ;;  %343 = vperm.xlu0 %566, %v340_v54  }
 0x20e   : > { %v331_v57 = vmul.f32 %v330_v56, %v329_v53 }
 0x210   : > { %v332_v58 = vsub.f32 %v328_v55, %v331_v57 }
 0x212   : > { %333 = vst.msk [vmem:[#allocation7] sm:$0xf] %vm326_vm4, %v332_v58 }
 0x219   : > { %v355_v59 = vld [vmem:[#allocation7] sm:$0xf] }
 0x21a   : > { %358 = vperm.xlu0 %566, %v355_v59  }
 0x288   : > { %v344_v2 = vpop.permute.xlu0 %343 }
 0x289   : > { %v351_v3 = vrot.slane %v344_v2, %v350_v1 }
 0x28b   : > { %v353_v7 = vmul.f32 %v351_v3, %v338_v4  ;;  %v354_v8 = vmul.f32 %v351_v3, %v339_v5 }
 0x295   : > { %v359_v6 = vpop.permute.xlu0 %358 }
 0x296   : > { %v366_v9 = vrot.slane %v359_v6, %v350_v1 }
 0x298   : > { %v368_v10 = vadd.f32 %v366_v9, %v353_v7  ;;  %v369_v11 = vadd.f32 %v366_v9, %v354_v8 }
 0x29a   : > { %v499_v12 = vmul.f32 -1.442695, %v368_v10  ;;  %v500_v13 = vmul.f32 -1.442695, %v369_v11 }
 0x29c   : > { %569 = vpow2.f32 %v499_v12 }
 0x29d   : > { %571 = vpow2.f32 %v500_v13 }
 0x2a9   : > { %v570_v14 = vpop.eup %569 }
 0x2aa   : > { %v572_v15 = vpop.eup %571  ;;  %v376_v16 = vadd.f32 1.0, %v570_v14 }
 0x2ab   : > { %v377_v17 = vadd.f32 1.0, %v572_v15 }
 0x2ac   : > { %573 = vrcp.f32 %v376_v16 }
 0x2ad   : > { %575 = vrcp.f32 %v377_v17 }
 0x2b9   : > { %v574_v18 = vpop.eup %573 }
 0x2ba   : > { %v576_v19 = vpop.eup %575  ;;  %v382_v20 = vmul.f32 %v574_v18, %v368_v10 }
 0x2bb   : > { %v383_v21 = vmul.f32 %v576_v19, %v369_v11 }
 0x2bc   : > { %384 = vst [vmem:[#allocation11] sm:$0xff] %v382_v20 }
 0x2bd   : > { %385 = vst [vmem:[#allocation11 + $0x8] sm:$0xff] %v383_v21 }
 0x2be PF: > { %p746_p5 = scmp.eq.s32.totalorder %s489_s15, 2  ;;  %s668_s5 = smov [#allocation11]  }
 0x2bf   : > { %s402_s6 = sshll.u32 %s668_s5, 4  ;;  %s403_s6 = int_to_ptr.vmem [resolvable:$true] %s402_s6 }
 0x2c0   : > { %s603_s7 = scalar_lea.vmem %s403_s6, 256  ;;  %s609_s8 = scalar_lea.vmem %s403_s6, 512 }
 0x2c1   : > { %p604_p6 = scmp.ne.s32.totalorder %s403_s6, %s603_s7  ;;  %p610_p9 = scmp.lt.s32.totalorder %s403_s6, %s403_s6 }
 0x2c2   : > { %p611_p10 = scmp.lt.s32.totalorder %s609_s8, %s603_s7 }
 0x2c3   : > { %p605_p7 = pnand %p604_p6, %p746_p5 }
 0x2c4   : > { %p612_p11 = por %p611_p10, %p610_p9 }
 0x2c5   : > { %p606_p8 = pneg %p605_p7 }
 0x2c7   : > { %p613_p12 = pnand %p612_p11, %p606_p8 }
 0x2c9   : > { %616 = shalt.err (!%p613_p12)
}
 0x2ca   : > { %s669_s9 = smov 128   ;;  %s670_s10 = smov 8  }
 0x2cb   : > { %510 = dma.vmem_to_hbm [thread:$0]  (%p746_p5), %s403_s6, 256, %s772_s3, [#allocation10], %s669_s9, %s669_s9, %s670_s10  }
 0x2cc PF: > { %p525_p13 = scmp.ge.s32.totalorder %s657_s14, 2  ;;  %p526_p0 = scmp.eq.s32.totalorder %s490_s16, 2 }
 0x2ce   : > { %p518_p1 = pnand %p526_p0, %p525_p13 }
 0x2d0   : > { %p519_p2 = pneg %p518_p1 }
 0x2d2   : > { %644 = dma.done.wait (%p519_p2), [#allocation10], 256  }
 0x2d3   : > { %646 = vsyncadd (%p519_p2), [#allocation10], 4294967040  ;;  %s19_s14 = sadd.s32 1, %s657_s14   ;;  %s775_s12 = smov %s653_s13 }
 0x2d4   : > { %p16_p3 = scmp.ge.s32.totalorder %s19_s14, 5   ;;  %s776_s13 = smov %s778_s17 }
 0x2d6   :  { %18 = sbr.rel (!%p16_p3) target bundleno = 5 (0x5), region = 104 }
 0x2db   :  { %423 = vsyncpa [#allocation9], 1 }
 0x2dc   :  { %425 = vsyncpa [#allocation9 + $0x1], 1 }
 0x2dd   :  { %426 = vsyncpa [#allocation10], 1 }
 0x2de   :  { %428 = vsyncpa [#allocation10 + $0x1], 1 }

</bundles_post_ra>
